<compile_context>
chip_gen: v7x
topology: tpu7x:2x2x1
jax: 0.10.0
libtpu: 0.0.40
codegen_flags: <defaults>
</compile_context>

<pallas_src>
import math
from functools import partial

import jax
import jax.numpy as jnp
from jax.experimental import pallas as pl
from jax.experimental.pallas import tpu as pltpu


def _round_up(x, m):
    return (x + m - 1) // m * m


def _vmem_capacity_bytes():
    """Physical VMEM per TensorCore; fall back to the smallest (v7x) if unknown."""
    try:
        info = pltpu.get_tpu_info()
        for attr in ("vmem_capacity_bytes", "vmem_size_bytes", "vmem_bytes"):
            v = getattr(info, attr, None)
            if v:
                return int(v)
    except Exception:
        pass
    return 64 * 1024 * 1024


# --------------------------------------------------------------------------- #
# Kernels
# --------------------------------------------------------------------------- #
def _linear_kernel_acc(x_ref, w_ref, o_ref, acc_ref, *, tk, x_resident):
    """(M, N, K) grid step; f32 VMEM accumulator resident across the K axis.

    x_ref: (tm, K)  if x_resident else (tm, tk)   -- activations
    w_ref: (tn, tk)                                -- weights in (out, in) layout
    o_ref: (tm, tn)                                -- output tile (resident over K)
    """
    k = pl.program_id(2)

    @pl.when(k == 0)
    def _():
        acc_ref[...] = jnp.zeros_like(acc_ref)

    if x_resident:
        start = pl.multiple_of(k * tk, tk)
        x_blk = x_ref[:, pl.ds(start, tk)]
    else:
        x_blk = x_ref[...]

    # Contract last dims of both operands: (tm, tk) x (tn, tk) -> (tm, tn).
    # This is x @ W.T on the original (out, in) layout -- no transposed weight
    # copy in HBM; Mosaic lowers the NT contraction via the MXU weight path.
    acc_ref[...] += jax.lax.dot_general(
        x_blk,
        w_ref[...],
        dimension_numbers=(((1,), (1,)), ((), ())),
        preferred_element_type=jnp.float32,
    )

    @pl.when(k == pl.num_programs(2) - 1)
    def _():
        o_ref[...] = acc_ref[...].astype(o_ref.dtype)


def _linear_kernel_single_k(x_ref, w_ref, o_ref):
    """Single K block: write straight to the output, no scratch round-trip."""
    o_ref[...] = jax.lax.dot_general(
        x_ref[...],
        w_ref[...],
        dimension_numbers=(((1,), (1,)), ((), ())),
        preferred_element_type=jnp.float32,
    ).astype(o_ref.dtype)


# --------------------------------------------------------------------------- #
# Tile / VMEM configuration
# --------------------------------------------------------------------------- #
def _select_config(n_rows, d_out, d_in, x_item, w_item, o_item,
                   tm=None, tn=None, tk=None):
    vmem = _vmem_capacity_bytes()
    big_vmem = vmem > (80 << 20)                 # v5e/v6e: 128 MiB; v7x: 64 MiB/TC
    vmem_limit = (100 << 20) if big_vmem else (56 << 20)
    budget = (80 << 20) if big_vmem else (44 << 20)

    tm_cap = 1024 if big_vmem else 512
    tn_cap = 2048
    tk_cap = 1024 if big_vmem else 512

    # ---- K (reduction) tiling; zero-pad instead of the tk=d_in VMEM blowup.
    if tk is not None:
        assert tk % 128 == 0 or tk == d_in, "tk must be a multiple of 128 (or d_in)"
        k_pad = d_in if d_in % tk == 0 else _round_up(d_in, tk)
        tk_sel = tk
    elif d_in <= tk_cap:
        k_pad, tk_sel = d_in, d_in               # one fat K block
    else:
        k_pad = d_in if d_in % 256 == 0 else _round_up(d_in, 256)
        tk_sel = 256
        for cand in (tk_cap, 768, 512, 256):
            if cand <= tk_cap and k_pad % cand == 0:
                tk_sel = cand
                break
    k_grid = pl.cdiv(k_pad, tk_sel)

    # ---- output tile (the arithmetic-intensity lever).
    tm_sel = tm if tm is not None else (n_rows if n_rows <= tm_cap else tm_cap)
    tn_sel = tn if tn is not None else (d_out if d_out <= tn_cap else tn_cap)

    # v7x has 2 TensorCores sharded over parallel grid axes: make sure at least
    # one parallel axis has >= 2 blocks so both cores get work.
    if (tn is None and not big_vmem and d_out > 128
            and pl.cdiv(n_rows, tm_sel) == 1 and pl.cdiv(d_out, tn_sel) == 1):
        tn_sel = max(128, _round_up(pl.cdiv(d_out, 2), 128))

    # ---- keep the activation K-strip resident when it is cheap.
    x_resident = (k_grid == 1) or (tm_sel * k_pad * x_item * 2 <= budget // 3)

    def usage(tm_, tn_, resident):
        x_cols = k_pad if resident else tk_sel
        return (tm_ * x_cols * x_item * 2            # x, double-buffered
                + tn_ * tk_sel * w_item * 2          # W tile, double-buffered
                + tm_ * tn_ * o_item * 2             # output tile, double-buffered
                + (tm_ * tn_ * 4 if k_grid > 1 else 0))  # f32 accumulator

    # shrink auto-picked tiles until the working set fits the VMEM budget
    while usage(tm_sel, tn_sel, x_resident) > budget:
        if tn is None and tn_sel > 128:
            tn_sel = max(128, _round_up(tn_sel // 2, 128))
        elif tm is None and tm_sel > 8:
            tm_sel = max(8, _round_up(tm_sel // 2, 8))
        elif x_resident and k_grid > 1:
            x_resident = False
        else:
            break

    return tm_sel, tn_sel, tk_sel, k_pad, k_grid, x_resident, vmem_limit


# --------------------------------------------------------------------------- #
# Wrapper
# --------------------------------------------------------------------------- #
def linear(x, w, *, tm=None, tn=None, tk=None):
    """y = x @ w.T.  x: (batch, ..., in_features); w: (out_features, in_features).

    For peak MXU throughput pass bf16 x and w; accumulation is always f32.
    """
    orig_shape = x.shape
    d_in = orig_shape[-1]
    d_out = w.shape[0]
    assert w.shape[1] == d_in, "weight shape must be (out_features, in_features)"

    x2d = x.reshape(-1, d_in)
    n_rows = x2d.shape[0]
    out_dtype = x.dtype

    x_item = jnp.dtype(x.dtype).itemsize
    w_item = jnp.dtype(w.dtype).itemsize
    o_item = jnp.dtype(out_dtype).itemsize

    (tm_, tn_, tk_, k_pad, k_grid, x_resident, vmem_limit) = _select_config(
        n_rows, d_out, d_in, x_item, w_item, o_item, tm=tm, tn=tn, tk=tk)

    # Zero-pad the reduction axis (zeros contribute nothing to the sum) so K
    # tiles stay small and lane-aligned instead of falling back to a huge
    # (tn, d_in) weight block.
    if k_pad != d_in:
        x2d = jnp.pad(x2d, ((0, 0), (0, k_pad - d_in)))
        w = jnp.pad(w, ((0, 0), (0, k_pad - d_in)))

    m_grid = pl.cdiv(n_rows, tm_)
    n_grid = pl.cdiv(d_out, tn_)
    grid = (m_grid, n_grid, k_grid)

    if x_resident:
        # Resident K-strip: x(i) is DMA'd once and sliced per K step in-kernel.
        x_spec = pl.BlockSpec((tm_, k_pad), lambda i, j, k: (i, 0))
    else:
        x_spec = pl.BlockSpec((tm_, tk_), lambda i, j, k: (i, k))
    w_spec = pl.BlockSpec((tn_, tk_), lambda i, j, k: (j, k))
    o_spec = pl.BlockSpec((tm_, tn_), lambda i, j, k: (i, j))

    if k_grid == 1:
        kernel = _linear_kernel_single_k
        scratch = []
    else:
        kernel = partial(_linear_kernel_acc, tk=tk_, x_resident=x_resident)
        scratch = [pltpu.VMEM((tm_, tn_), jnp.float32)]

    # Honest HBM-traffic estimate (advisory for XLA scheduling around the call).
    x_bytes = n_rows * k_pad * x_item
    w_bytes = d_out * k_pad * w_item
    o_bytes = n_rows * d_out * o_item
    cost = pl.CostEstimate(
        flops=2 * n_rows * d_out * d_in,
        transcendentals=0,
        bytes_accessed=(x_bytes * (1 if x_resident else n_grid)
                        + w_bytes * m_grid
                        + o_bytes),
    )

    out2d = pl.pallas_call(
        kernel,
        out_shape=jax.ShapeDtypeStruct((n_rows, d_out), out_dtype),
        grid_spec=pltpu.PrefetchScalarGridSpec(
            num_scalar_prefetch=0,
            grid=grid,
            in_specs=[x_spec, w_spec],
            out_specs=o_spec,
            scratch_shapes=scratch,
        ),
        compiler_params=pltpu.CompilerParams(
            dimension_semantics=("parallel", "parallel", "arbitrary"),
            vmem_limit_bytes=vmem_limit,
        ),
        cost_estimate=cost,
    )(x2d, w)
    return out2d.reshape(*orig_shape[:-1], d_out)


def init_linear_params(key, in_features, out_features, dtype=jnp.float32):
    # Matches torch.nn.init.trunc_normal_(mean=0, std=std, a=-3*std, b=3*std)
    std = math.sqrt(2.0 / (in_features + out_features))
    w = std * jax.random.truncated_normal(
        key, -3.0, 3.0, (out_features, in_features), dtype)
    return w


def linear_reference(x, w):
    return jnp.einsum("...i,oi->...o", x, w,
                      precision=jax.lax.Precision.HIGHEST)


if __name__ == "__main__":
    key = jax.random.PRNGKey(0)
    k1, k2, k3, k4, k5, k6 = jax.random.split(key, 6)

    # 1) Default auto config (small shape -> single K block -> direct-write path).
    batch, seq, d_in, d_out = 2, 8, 256, 256
    x = jax.random.normal(k1, (batch, seq, d_in), dtype=jnp.float32)
    w = init_linear_params(k2, d_in, d_out, dtype=jnp.float32)
    ref = linear_reference(x, w)
    out = jax.block_until_ready(linear(x, w))
    assert out.shape == (batch, seq, d_out)
    assert jnp.allclose(out, ref, atol=1e-4, rtol=1e-4), "default-config mismatch"

    # 2) Forced small tiles: exercises the (M, N, K) grid, the resident-K-strip
    #    slicing, the f32 accumulator, and ragged M/N boundary blocks.
    b2, s2, din2, dout2 = 2, 7, 384, 320          # n_rows=14; neither dim tile-aligned
    x2 = jax.random.normal(k3, (b2, s2, din2), dtype=jnp.float32)
    w2 = init_linear_params(k4, din2, dout2, dtype=jnp.float32)
    ref2 = linear_reference(x2, w2)
    out2 = jax.block_until_ready(linear(x2, w2, tm=8, tn=128, tk=128))
    assert out2.shape == (b2, s2, dout2)
    assert jnp.allclose(out2, ref2, atol=2e-4, rtol=2e-4), "tiled-config mismatch"

    # 3) d_in not a multiple of the K tile -> wrapper zero-pads the reduction axis.
    b3, s3, din3, dout3 = 2, 5, 160, 192
    x3 = jax.random.normal(k5, (b3, s3, din3), dtype=jnp.float32)
    w3 = init_linear_params(k6, din3, dout3, dtype=jnp.float32)
    ref3 = linear_reference(x3, w3)
    out3 = jax.block_until_ready(linear(x3, w3, tm=8, tn=128, tk=128))
    assert out3.shape == (b3, s3, dout3)
    assert jnp.allclose(out3, ref3, atol=2e-4, rtol=2e-4), "padded-K mismatch"

    # 4) bf16 operands (recommended production dtype); f32 accumulation inside.
    xb = x.astype(jnp.bfloat16)
    wb = w.astype(jnp.bfloat16)
    outb = jax.block_until_ready(linear(xb, wb))
    assert outb.dtype == jnp.bfloat16
    assert jnp.allclose(outb.astype(jnp.float32), ref, atol=3e-2, rtol=3e-2), \
        "bf16 mismatch"

    print("KERNEL_OK")
</pallas_src>

<mosaic_0001>
module attributes {stable_mosaic.version = 11 : i64} {
  func.func @_linear_kernel_single_k(%arg0: i32, %arg1: i32, %arg2: i32, %arg3: memref<16x256xf32, #tpu.memory_space<vmem>>, %arg4: memref<128x256xf32, #tpu.memory_space<vmem>>, %arg5: memref<16x128xf32, #tpu.memory_space<vmem>>) attributes {dimension_semantics = [#tpu.dimension_semantics<parallel>, #tpu.dimension_semantics<parallel>, #tpu.dimension_semantics<arbitrary>], iteration_bounds = array<i64: 1, 2, 1>, scalar_prefetch = 0 : i64, scratch_operands = 0 : i64, tpu.core_type = #tpu.core_type<tc>, window_params = [{transform_indices = @transform_0, window_bounds = array<i64: 16, 256>}, {transform_indices = @transform_1, window_bounds = array<i64: 128, 256>}, {transform_indices = @transform_2, window_bounds = array<i64: 16, 128>}]} {
    %c0 = arith.constant 0 : index
    %c0_0 = arith.constant 0 : index
    %0 = vector.load %arg3[%c0, %c0_0] : memref<16x256xf32, #tpu.memory_space<vmem>>, vector<16x256xf32>
    %c0_1 = arith.constant 0 : index
    %c0_2 = arith.constant 0 : index
    %1 = vector.load %arg4[%c0_1, %c0_2] : memref<128x256xf32, #tpu.memory_space<vmem>>, vector<128x256xf32>
    %cst = arith.constant dense<0.000000e+00> : vector<16x128xf32>
    %2 = tpu.matmul %0, %1, %cst {dimension_numbers = #tpu.dot_dimension_numbers<[1], [1], [0], [0], [0, 0, 1, 0], [], []>} : vector<16x256xf32>, vector<128x256xf32>, vector<16x128xf32> -> vector<16x128xf32>
    %c0_3 = arith.constant 0 : index
    %c0_4 = arith.constant 0 : index
    %3 = vector.load %arg5[%c0_3, %c0_4] : memref<16x128xf32, #tpu.memory_space<vmem>>, vector<16x128xf32>
    tpu.vector_store %arg5[%c0_3, %c0_4], %2 {strides = array<i32>} : memref<16x128xf32, #tpu.memory_space<vmem>>, vector<16x128xf32>,
    return
  }
  func.func @transform_0(%arg0: i32, %arg1: i32, %arg2: i32) -> (i32, i32) {
    %c0_i32 = arith.constant 0 : i32
    %c0_i32_0 = arith.constant 0 : i32
    return %arg0, %c0_i32 : i32, i32
  }
  func.func @transform_1(%arg0: i32, %arg1: i32, %arg2: i32) -> (i32, i32) {
    %c0_i32 = arith.constant 0 : i32
    return %arg1, %arg2 : i32, i32
  }
  func.func @transform_2(%arg0: i32, %arg1: i32, %arg2: i32) -> (i32, i32) {
    %c0_i32 = arith.constant 0 : i32
    return %arg0, %arg1 : i32, i32
  }
}

</mosaic_0001>

<bundles_post_ra>
// kernel: tpu_custom_call.1
= control target key start
LH: loop header
LB: loop body
LE: loop exit
PB: predicated region body
PF: predicated region fallthrough
CT: control target
= control target key end

     0   :  { %7 = vsyncpa [#allocation3], 0  ;;  %s1019_s0 = inlined_call_operand.hbm [shape: f32[16,256], index: 0, kind: input, shape index: {}]   ;;  %s1020_s1 = inlined_call_operand.hbm [shape: f32[256,256], index: 1, kind: input, shape index: {}]   ;;  %s1021_s2 = inlined_call_operand.hbm [shape: f32[16,256], index: 2, kind: output, shape index: {}]  }
   0x1   :  { %8 = vsyncpa [#allocation6], 0 }
   0x2   :  { %10 = vsyncpa [#allocation6 + $0x1], 0 }
   0x3   :  { %11 = vsyncpa [#allocation4], 0 }
   0x4   :  { %13 = vsyncpa [#allocation4 + $0x1], 0  ;;  %s759_s9 = smov 0   ;;  %s761_s10 = smov 0  }
   0x5   :  { %s763_s11 = smov 0   ;;  %s765_s12 = smov 0  }
   0x6   :  { %s767_s13 = smov 0   ;;  %s769_s14 = smov 0  }
   0x7 LB: > { %s445_s15 = sadd.s32 4294967295, %s734_s14   ;;  %s446_s16 = sadd.s32 4294967294, %s734_s14   ;;  %s734_s14 = sphi %s769_s14, %s19_s14   ;;  %s730_s13 = sphi %s767_s13, %s1045_s13   ;;  %s726_s12 = sphi %s765_s12, %s1044_s12   ;;  %s722_s11 = sphi %s763_s11, %s1043_s11   ;;  %s718_s10 = sphi %s761_s10, %s1042_s10   ;;  %s714_s9 = sphi %s759_s9, %s1041_s9  }
   0x8   : > { %p86_p0 = scmp.ne.s32.totalorder %s718_s10, %s714_s9  ;;  %p793_p1 = scmp.eq.s32.totalorder %s445_s15, 0 }
   0x9   : > { %p797_p2 = scmp.eq.s32.totalorder %s445_s15, 1  ;;  %p118_p3 = scmp.eq.s32.totalorder %s446_s16, 1 }
   0xa   : > { %s1026_s17 = scalar_select %p793_p1, 1, 0 }
   0xb   : > { %s1027_s18 = scalar_select %p797_p2, 1, 0 }
   0xc   : > { %p803_p4 = por %p793_p1, %p86_p0  ;;  %p447_p5 = scmp.ge.s32.totalorder %s734_s14, 1 }
   0xd   : > { %p808_p6 = por %p118_p3, %p86_p0  ;;  %p125_p7 = scmp.lt.s32.totalorder %s734_s14, 3 }
   0xe   : > { %s1028_s19 = scalar_select %p803_p4, 1, 0 }
   0xf   : > { %s1029_s20 = scalar_select %p808_p6, 1, 0 }
  0x10   : > { %p813_p8 = pnand %p447_p5, %p125_p7  ;;  %s736_s22 = smov [#allocation2]  }
  0x11   : > { %s141_s23 = sshll.u32 %s736_s22, 4  ;;  %s34_s25 = sadd.s32 1, %s730_s13  ;;  %s142_s23 = int_to_ptr.vmem [resolvable:$true] %s141_s23 }
  0x12   : > { %s1030_s21 = scalar_select %p813_p8, 1, 0 }
  0x13   : > { %p520_p9 = pneg %p813_p8  ;;  %s590_s28 = scalar_lea.hbm %s1019_s0, 512 }
  0x14   : > { %p591_p12 = scmp.ne.s32.totalorder %s1019_s0, %s590_s28  ;;  %p597_p5 = scmp.lt.u32.totalorder %s590_s28, %s1019_s0 }
  0x15   : > { %p822_p11 = pnand %p520_p9, %p793_p1 }
  0x17   : > { %p592_p13 = pneg %p822_p11 }
  0x19   : > { %p593_p0 = pnand %p592_p13, %p591_p12 }
  0x1b   : > { %p594_p3 = pneg %p593_p0 }
  0x1d   : > { %p599_p7 = pnand %p597_p5, %p594_p3 }
  0x1f   : > { %602 = shalt.err (!%p599_p7)
}
  0x20   : > { %s603_s5 = scalar_lea.vmem %s142_s23, 512  ;;  %p611_p4 = scmp.lt.s32.totalorder %s142_s23, %s142_s23 }
  0x21   : > { %p604_p9 = scmp.ne.s32.totalorder %s142_s23, %s603_s5  ;;  %p612_p1 = scmp.lt.s32.totalorder %s603_s5, %s603_s5 }
  0x23   : > { %p606_p10 = pnand %p604_p9, %p592_p13  ;;  %p613_p8 = por %p612_p1, %p611_p4 }
  0x25   : > { %p607_p6 = pneg %p606_p10 }
  0x27   : > { %p614_p2 = pnand %p613_p8, %p607_p6 }
  0x29   : > { %617 = shalt.err (!%p614_p2)
}
  0x2a   : > { %s737_s6 = smov 256   ;;  %s738_s7 = smov 16  }
  0x2b   : > { %523 = dma.hbm_to_vmem [thread:$0]  (!%p822_p11), %s1019_s0, 512, %s142_s23, [#allocation3], %s737_s6, %s737_s6, %s738_s7  }
  0x2c   : > { %p36_p1 = scmp.ge.s32.totalorder %s34_s25, 2  ;;  %s73_s16 = sadd.s32 1, %s722_s11 }
  0x2d   : > { %p80_p2 = scmp.ne.s32.totalorder %s722_s11, %s718_s10  ;;  %p81_p4 = scmp.eq.s32.totalorder %s734_s14, 0 }
  0x2e   : > { %s1047_s25 = smov (%p36_p1, %s34_s25), 0  ;;  %p1033_p8 = scmp.ne.s32.totalorder %s1027_s18, 0 }
  0x2f   : > { %p852_p6 = por %p81_p4, %p80_p2  ;;  %s68_s26 = ssub.s32 %s730_s13, %s1047_s25 }
  0x30   : > { %p858_p10 = por %p1033_p8, %p80_p2  ;;  %p533_p12 = scmp.lt.s32.totalorder %s734_s14, 2 }
  0x31   : > { %p71_p11 = scmp.eq.s32.totalorder %s68_s26, 0  ;;  %s155_s23 = sand.u32 1, %s722_s11  }
  0x32   : > { %s450_s27 = sshll.u32 %s155_s23, 8  ;;  %s463_s29 = sshll.u32 %s730_s13, 12 }
  0x33   : > { %s867_s28 = scalar_select %p71_p11, %s722_s11, %s73_s16  }
  0x34   : > { %s873_s4 = scalar_lea.hbm %s1020_s1, %s463_s29  ;;  %s159_s18 = scalar_lea.vmem [#allocation5], %s450_s27 }
  0x35   : > { %s169_s5 = sshll.u32 %s159_s18, 4  ;;  %p879_p13 = pnand %p533_p12, %p852_p6  ;;  %s875_s5 = int_to_ptr.vmem [resolvable:$true] %s169_s5 }
  0x36   : > { %s883_s15 = scalar_lea.sflag [#allocation6], %s155_s23  ;;  %s618_s16 = scalar_lea.hbm %s873_s4, 4096 }
  0x37   : > { %p619_p0 = scmp.ne.s32.totalorder %s873_s4, %s618_s16  ;;  %p620_p3 = pneg %p879_p13 }
  0x38   : > { %s623_s22 = scalar_lea.hbm %s1020_s1, 8192  ;;  %p624_p9 = scmp.lt.u32.totalorder %s873_s4, %s1020_s1 }
  0x39   : > { %p621_p5 = pnand %p620_p3, %p619_p0  ;;  %p625_p1 = scmp.lt.u32.totalorder %s623_s22, %s618_s16 }
  0x3a   : > { %p627_p4 = scmp.lt.u32.totalorder %s618_s16, %s873_s4 }
  0x3b   : > { %p622_p7 = pneg %p621_p5  ;;  %p626_p2 = por %p625_p1, %p624_p9 }
  0x3d   : > { %p628_p6 = por %p627_p4, %p626_p2 }
  0x3f   : > { %p629_p8 = pnand %p628_p6, %p622_p7 }
  0x41   : > { %632 = shalt.err (!%p629_p8)
}
  0x42   : > { %s633_s23 = scalar_lea.vmem %s875_s5, 4096  ;;  %s739_s3 = smov [#allocation5]  }
  0x43   : > { %p634_p12 = scmp.ne.s32.totalorder %s875_s5, %s633_s23  ;;  %s638_s18 = sshll.u32 %s739_s3, 4  ;;  %s639_s18 = int_to_ptr.vmem [resolvable:$false] %s638_s18 }
  0x44   : > { %s640_s26 = scalar_lea.vmem %s639_s18, 8192  ;;  %p641_p5 = scmp.lt.s32.totalorder %s875_s5, %s639_s18 }
  0x45   : > { %p636_p11 = pnand %p634_p12, %p620_p3  ;;  %p642_p9 = scmp.lt.s32.totalorder %s640_s26, %s633_s23 }
  0x47   : > { %p637_p0 = pneg %p636_p11  ;;  %p643_p1 = por %p642_p9, %p641_p5 }
  0x49   : > { %p644_p2 = pnand %p643_p1, %p637_p0 }
  0x4b   : > { %647 = shalt.err (!%p644_p2)
}
  0x4c   : > { %527 = dma.hbm_to_vmem [thread:$0]  (!%p879_p13), %s873_s4, 4096, %s875_s5, %s883_s15, %s737_s6, %s737_s6, %s738_s7  }
  0x4d   : > { %p1036_p3 = scmp.ne.s32.totalorder %s1030_s21, 0 }
  0x4e   : > { %p1037_p7 = scmp.ne.s32.totalorder (!%p1036_p3), %s1026_s17, 0 }
  0x4f   : > { %181 = sbr.rel (%p1036_p3) target bundleno = 386 (0x182), region = 28 }
  0x56   : > { %701 = dma.done.wait (%p1037_p7), [#allocation3], 512  }
  0x57   : > { %703 = vsyncadd (%p1037_p7), [#allocation3], 4294966784  ;;  %s921_s16 = sand.u32 1, %s718_s10   ;;  %p1038_p13 = scmp.ne.s32.totalorder %s1028_s19, 0 }
  0x58   : > { %s456_s8 = sshll.u32 %s921_s16, 8  ;;  %s188_s27 = scalar_lea.sflag [#allocation6], %s921_s16 }
  0x59   : > { %s925_s22 = scalar_lea.vmem [#allocation5], %s456_s8 }
  0x5a   : > { %705 = dma.done.wait (%p1038_p13), %s188_s27, 4096  }
  0x5b   : > { %707 = vsyncadd (%p1038_p13), %s188_s27, 4294963200  ;;  %v221_v0 = vld [vmem:[%s925_s22 + $0x8] sm:$0xff]  ;;  %v223_v1 = vld [vmem:[%s925_s22 + $0x18] sm:$0xff]  ;;  %s457_s17 = sshll.u32 %s921_s16, 4  ;;  %s459_s6 = sshll.u32 %s726_s12, 7 }
  0x5c   : > { %v220_v2 = vld [vmem:[%s925_s22] sm:$0xff]  ;;  %v464_v3 = vpack.c.bf16 %v223_v1, %v221_v0  ;;  %v222_v4 = vld [vmem:[%s925_s22 + $0x10] sm:$0xff]  ;;  %v225_v5 = vld [vmem:[%s925_s22 + $0x28] sm:$0xff]  ;;  %s211_s19 = scalar_lea.vmem [#allocation7], %s457_s17  ;;  %s970_s5 = scalar_lea.hbm %s1021_s2, %s459_s6 }
  0x5d   : > { %v227_v6 = vld [vmem:[%s925_s22 + $0x38] sm:$0xff]  ;;  %v466_v7 = vpack.c.bf16 %v222_v4, %v220_v2  ;;  %v224_v9 = vld [vmem:[%s925_s22 + $0x20] sm:$0xff]  ;;  %v226_v10 = vld [vmem:[%s925_s22 + $0x30] sm:$0xff]  ;;  %s345_s21 = sshll.u32 %s211_s19, 4  ;;  %s330_s15 = scalar_lea.sflag [#allocation4], %s921_s16  ;;  %s965_s21 = int_to_ptr.vmem [resolvable:$true] %s345_s21 }
  0x5e   : > { %v468_v8 = vpack.c.bf16 %v227_v6, %v225_v5  ;;  %465 = vmatprep.subr.bf16.mxu0 %v464_v3  ;;  %496 = vmatprep.subr.bf16.mxu1 %v464_v3  ;;  %v229_v11 = vld [vmem:[%s925_s22 + $0x48] sm:$0xff]  ;;  %v231_v12 = vld [vmem:[%s925_s22 + $0x58] sm:$0xff]  ;;  %v470_v13 = vpack.c.bf16 %v226_v10, %v224_v9  ;;  %v228_v17 = vld [vmem:[%s925_s22 + $0x40] sm:$0xff]  ;;  %s648_s29 = scalar_lea.vmem %s965_s21, 256  ;;  %s740_s12 = smov [#allocation7]  }
  0x5f   : > { %467 = vmatpush1.bf16.xpose.msra.mxu0 %v466_v7  ;;  %504 = vmatpush1.bf16.xpose.msra.mxu1 %v466_v7  ;;  %v472_v14 = vpack.c.bf16 %v231_v12, %v229_v11  ;;  %v217_v15 = vld [vmem:[#allocation2 + $0x8] sm:$0xff]  ;;  %v219_v16 = vld [vmem:[#allocation2 + $0x18] sm:$0xff]  ;;  %v230_v18 = vld [vmem:[%s925_s22 + $0x50] sm:$0xff]  ;;  %p649_p4 = scmp.ne.s32.totalorder %s965_s21, %s648_s29  ;;  %s652_s30 = sshll.u32 %s740_s12, 4  ;;  %s653_s30 = int_to_ptr.vmem [resolvable:$false] %s652_s30 }
  0x60   : > { %469 = vmatprep.subr.bf16.mxu0 %v468_v8  ;;  %497 = vmatprep.subr.bf16.mxu1 %v468_v8  ;;  %v233_v19 = vld [vmem:[%s925_s22 + $0x68] sm:$0xff]  ;;  %v235_v20 = vld [vmem:[%s925_s22 + $0x78] sm:$0xff]  ;;  %v474_v21 = vpack.c.bf16 %v230_v18, %v228_v17  ;;  %v232_v23 = vld [vmem:[%s925_s22 + $0x60] sm:$0xff]  ;;  %s654_s23 = scalar_lea.vmem %s653_s30, 512  ;;  %p655_p12 = scmp.lt.s32.totalorder %s965_s21, %s653_s30 }
  0x61   : > { %316 = vmatprep.mubr.f32.mxu0 %v217_v15  ;;  %321 = vmatprep.mubr.f32.mxu1 %v219_v16  ;;  %v476_v22 = vpack.c.bf16 %v235_v20, %v233_v19  ;;  %v234_v24 = vld [vmem:[%s925_s22 + $0x70] sm:$0xff]  ;;  %v237_v25 = vld [vmem:[%s925_s22 + $0x88] sm:$0xff]  ;;  %v239_v26 = vld [vmem:[%s925_s22 + $0x98] sm:$0xff]  ;;  %p650_p6 = pnand %p649_p4, %p858_p10  ;;  %p656_p11 = scmp.lt.s32.totalorder %s654_s23, %s648_s29 }
  0x62   : > { %v478_v27 = vpack.c.bf16 %v234_v24, %v232_v23  ;;  %v480_v28 = vpack.c.bf16 %v239_v26, %v237_v25  ;;  %v236_v29 = vld [vmem:[%s925_s22 + $0x80] sm:$0xff]  ;;  %v238_v30 = vld [vmem:[%s925_s22 + $0x90] sm:$0xff]  ;;  %v241_v31 = vld [vmem:[%s925_s22 + $0xa8] sm:$0xff] }
  0x63   : > { %v243_v32 = vld [vmem:[%s925_s22 + $0xb8] sm:$0xff]  ;;  %v482_v33 = vpack.c.bf16 %v238_v30, %v236_v29  ;;  %v240_v35 = vld [vmem:[%s925_s22 + $0xa0] sm:$0xff]  ;;  %v242_v36 = vld [vmem:[%s925_s22 + $0xb0] sm:$0xff]  ;;  %p651_p8 = pneg %p650_p6  ;;  %p657_p0 = por %p656_p11, %p655_p12 }
  0x64   : > { %v484_v34 = vpack.c.bf16 %v243_v32, %v241_v31  ;;  %v245_v37 = vld [vmem:[%s925_s22 + $0xc8] sm:$0xff]  ;;  %v247_v38 = vld [vmem:[%s925_s22 + $0xd8] sm:$0xff]  ;;  %v486_v39 = vpack.c.bf16 %v242_v36, %v240_v35  ;;  %v244_v41 = vld [vmem:[%s925_s22 + $0xc0] sm:$0xff] }
  0x65   : > { %v488_v40 = vpack.c.bf16 %v247_v38, %v245_v37  ;;  %v246_v42 = vld [vmem:[%s925_s22 + $0xd0] sm:$0xff]  ;;  %v249_v43 = vld [vmem:[%s925_s22 + $0xe8] sm:$0xff]  ;;  %v251_v44 = vld [vmem:[%s925_s22 + $0xf8] sm:$0xff]  ;;  %p658_p5 = pnand %p657_p0, %p651_p8 }
  0x66   : > { %v490_v45 = vpack.c.bf16 %v246_v42, %v244_v41  ;;  %v492_v46 = vpack.c.bf16 %v251_v44, %v249_v43  ;;  %v248_v47 = vld [vmem:[%s925_s22 + $0xe0] sm:$0xff]  ;;  %v250_v48 = vld [vmem:[%s925_s22 + $0xf0] sm:$0xff] }
  0x67   : > { %471 = vmatpush1.bf16.xpose.msra.mxu0 %v470_v13  ;;  %505 = vmatpush1.bf16.xpose.msra.mxu1 %v470_v13  ;;  %v494_v49 = vpack.c.bf16 %v250_v48, %v248_v47  ;;  %v216_v50 = vld [vmem:[#allocation2] sm:$0xff]  ;;  %v218_v51 = vld [vmem:[#allocation2 + $0x10] sm:$0xff] }
  0x68   : > { %473 = vmatprep.subr.bf16.mxu0 %v472_v14  ;;  %498 = vmatprep.subr.bf16.mxu1 %v472_v14 }
  0x6f   : > { %475 = vmatpush1.bf16.xpose.msra.mxu0 %v474_v21  ;;  %506 = vmatpush1.bf16.xpose.msra.mxu1 %v474_v21 }
  0x70   : > { %477 = vmatprep.subr.bf16.mxu0 %v476_v22  ;;  %499 = vmatprep.subr.bf16.mxu1 %v476_v22 }
  0x77   : > { %479 = vmatpush1.bf16.xpose.msra.mxu0 %v478_v27  ;;  %507 = vmatpush1.bf16.xpose.msra.mxu1 %v478_v27 }
  0x78   : > { %481 = vmatprep.subr.bf16.mxu0 %v480_v28  ;;  %500 = vmatprep.subr.bf16.mxu1 %v480_v28 }
  0x7f   : > { %483 = vmatpush1.bf16.xpose.msra.mxu0 %v482_v33  ;;  %508 = vmatpush1.bf16.xpose.msra.mxu1 %v482_v33 }
  0x80   : > { %485 = vmatprep.subr.bf16.mxu0 %v484_v34  ;;  %501 = vmatprep.subr.bf16.mxu1 %v484_v34 }
  0x87   : > { %487 = vmatpush1.bf16.xpose.msra.mxu0 %v486_v39  ;;  %509 = vmatpush1.bf16.xpose.msra.mxu1 %v486_v39 }
  0x88   : > { %489 = vmatprep.subr.bf16.mxu0 %v488_v40  ;;  %502 = vmatprep.subr.bf16.mxu1 %v488_v40 }
  0x8f   : > { %491 = vmatpush1.bf16.xpose.msra.mxu0 %v490_v45  ;;  %510 = vmatpush1.bf16.xpose.msra.mxu1 %v490_v45 }
  0x90   : > { %493 = vmatprep.subr.bf16.mxu0 %v492_v46  ;;  %503 = vmatprep.subr.bf16.mxu1 %v492_v46 }
  0x97   : > { %495 = vmatpush1.bf16.xpose.msra.mxu0 %v494_v49  ;;  %511 = vmatpush1.bf16.xpose.msra.mxu1 %v494_v49 }
  0x9e   : > { %317 = vmatmul.mubr.f32.vlgmr.msra.gmra.mrb[0].mxu0 %v216_v50  ;;  %322 = vmatmul.mubr.f32.vlgmr.msra.gmra.mrb[0].mxu1 %v218_v51 }
 0x171   : > { %v318_v52 = vpop.f32.mrb[0].mxu0  ;;  %v323_v53 = vpop.f32.mrb[0].mxu1 }
 0x172   : > { %327 = vst [vmem:[%s211_s19] sm:$0xff] %v318_v52  ;;  %328 = vst [vmem:[%s211_s19 + $0x8] sm:$0xff] %v323_v53  ;;  %v320_v54 = vpop.f32.mrb[1].mxu0  ;;  %v325_v55 = vpop.f32.mrb[1].mxu1 }
 0x173   : > { %661 = shalt.err (!%p658_p5)
}
 0x174   : > { %s662_s3 = scalar_lea.hbm %s970_s5, 256  ;;  %s666_s8 = scalar_lea.hbm %s1021_s2, 512 }
 0x175   : > { %p663_p9 = scmp.ne.s32.totalorder %s970_s5, %s662_s3  ;;  %p667_p3 = scmp.lt.u32.totalorder %s970_s5, %s1021_s2 }
 0x176   : > { %p668_p7 = scmp.lt.u32.totalorder %s666_s8, %s662_s3  ;;  %p670_p4 = scmp.lt.u32.totalorder %s662_s3, %s970_s5 }
 0x177   : > { %p664_p1 = pnand %p663_p9, %p858_p10 }
 0x178   : > { %p669_p13 = por %p668_p7, %p667_p3 }
 0x179   : > { %p665_p2 = pneg %p664_p1 }
 0x17a   : > { %p671_p6 = por %p670_p4, %p669_p13 }
 0x17c   : > { %p672_p8 = pnand %p671_p6, %p665_p2 }
 0x17e   : > { %675 = shalt.err (!%p672_p8)
}
 0x17f   : > { %s741_s17 = smov 128   ;;  %s742_s19 = smov 256  }
 0x180   : > { %s743_s6 = smov 8  }
 0x181   : > { %518 = dma.vmem_to_hbm [thread:$0]  (%p858_p10), %s965_s21, 256, %s970_s5, %s330_s15, %s741_s17, %s742_s19, %s743_s6  }
 0x182 PF: > { %s360_s7 = sand.u32 1, %s714_s9   ;;  %p1039_p12 = scmp.ne.s32.totalorder %s1029_s20, 0 }
 0x183   : > { %p1040_p11 = scmp.ge.s32.totalorder %s734_s14, 2  ;;  %s361_s4 = scalar_lea.sflag [#allocation4], %s360_s7 }
 0x185   : > { %p529_p0 = pnand %p1040_p11, %p1039_p12 }
 0x187   : > { %709 = dma.done.wait (!%p529_p0), %s361_s4, 256  }
 0x188   : > { %711 = vsyncadd (!%p529_p0), %s361_s4, 4294967040  ;;  %s19_s14 = sadd.s32 1, %s734_s14   ;;  %s1041_s9 = smov %s718_s10 }
 0x189   : > { %p16_p5 = scmp.ge.s32.totalorder %s19_s14, 4   ;;  %s1042_s10 = smov %s722_s11 }
 0x18a   : > { %s1043_s11 = smov %s867_s28  ;;  %s1044_s12 = smov %s730_s13 }
 0x18b   : > { %s1045_s13 = smov %s1047_s25  ;;  %18 = sbr.rel (!%p16_p5) target bundleno = 7 (0x7), region = 79 }
 0x192   :  { %366 = vsyncpa [#allocation3], 1 }
 0x193   :  { %368 = vsyncpa [#allocation3 + $0x1], 1 }
 0x194   :  { %369 = vsyncpa [#allocation6], 1 }
 0x195   :  { %371 = vsyncpa [#allocation6 + $0x1], 1 }
 0x196   :  { %372 = vsyncpa [#allocation4], 1 }
 0x197   :  { %374 = vsyncpa [#allocation4 + $0x1], 1 }

</bundles_post_ra>
